<compile_context>
chip_gen: v6e
topology: v6e:2x2x1
jax: 0.10.0
libtpu: 0.0.40
codegen_flags: <defaults>
</compile_context>

<pallas_src>
import math

import jax
import jax.numpy as jnp
from jax.experimental import pallas as pl
from jax.experimental.pallas import tpu as pltpu


def _cdiv(a, b):
    return (a + b - 1) // b


def _round_up(x, m):
    return _cdiv(x, m) * m


def _fused_proj_kernel(x_ref, w_ref, b_ref, out_ref):
    """out = x @ W_fold + b_fold  (one MXU matmul; bias add on the VPU)."""
    acc = jnp.dot(x_ref[...], w_ref[...], preferred_element_type=jnp.float32)
    out_ref[...] = (acc + b_ref[...]).astype(out_ref.dtype)


def cross_attention_forward(query_features, key_value_features, params,
                            num_heads, block_rows=None):
    """Pallas implementation of CrossAttentionModule.forward (inference).

    query_features:     (N, E)  (mathematically dead here: single-key softmax)
    key_value_features: (N, E)
    params: (wq, wk, wv, wo, bq, bk, bv, bo), PyTorch (out, in) weight layout.
    returns: attn_output (N, E), attn_weights (N, 1, 1)
    """
    n, e = key_value_features.shape
    assert query_features.shape == (n, e)
    assert e % num_heads == 0
    _wq, _wk, wv, wo, _bq, _bk, bv, bo = params

    hi = jax.lax.Precision.HIGHEST
    wv = jnp.asarray(wv, jnp.float32)
    wo = jnp.asarray(wo, jnp.float32)
    bv = jnp.asarray(bv, jnp.float32)
    bo = jnp.asarray(bo, jnp.float32)

    # --- 1. Fold the value + output projections into one GEMM (f32 HIGHEST) ---
    w_fold = jnp.dot(wv.T, wo.T, precision=hi)                       # (E, E)
    b_fold = jnp.dot(bv[None, :], wo.T, precision=hi) + bo[None, :]  # (1, E)

    # --- 2. Pack rows so the kernel's output last dim is a lane-dense 128 ---
    pack = 1
    if e < 128 and 128 % e == 0 and n % (128 // e) == 0:
        pack = 128 // e
    pe = pack * e
    rows = n // pack
    x = key_value_features.reshape(rows, pe)          # row-major view, no copy
    if pack > 1:
        w_run = jnp.kron(jnp.eye(pack, dtype=w_fold.dtype), w_fold)  # block-diag
        b_run = jnp.tile(b_fold, (1, pack))
    else:
        w_run, b_run = w_fold, b_fold
    # Keep the MXU operands in the activation dtype (bf16 inputs -> bf16 weight);
    # the bias add stays in f32 on the accumulator.
    w_run = w_run.astype(key_value_features.dtype)

    # --- 3./4. Tile selection: big blocks, no padding, ragged last block ------
    if block_rows is None:
        cap = 2048
        if rows <= cap:
            block_rows = rows                    # full dim -> always a legal block
            if rows >= 16:
                # >= 2 grid steps so v7x can shard the 'parallel' axis across
                # both TensorCores (no-op on single-TC v5e/v6e).
                block_rows = _round_up(_cdiv(rows, 2), 8)
        else:
            block_rows = cap
    grid = _cdiv(rows, block_rows)

    itemsize = jnp.dtype(key_value_features.dtype).itemsize
    w_itemsize = jnp.dtype(w_run.dtype).itemsize
    # Double-buffered activation in/out tiles + resident weight/bias (+ slack).
    tile_bytes = 2 * 2 * block_rows * pe * itemsize
    weight_bytes = 2 * (pe * pe * w_itemsize + pe * 4)
    vmem_limit = min(max(2 * (tile_bytes + weight_bytes), 32 << 20), 64 << 20)

    cost = pl.CostEstimate(
        flops=2 * rows * pe * pe,
        transcendentals=0,
        bytes_accessed=2 * rows * pe * itemsize + pe * pe * w_itemsize + pe * 4)

    row_map = lambda i: (i, 0)
    const_map = lambda i: (0, 0)

    out2d = pl.pallas_call(
        _fused_proj_kernel,
        out_shape=jax.ShapeDtypeStruct((rows, pe), key_value_features.dtype),
        grid_spec=pltpu.PrefetchScalarGridSpec(
            num_scalar_prefetch=0,
            grid=(grid,),
            in_specs=[
                pl.BlockSpec((block_rows, pe), row_map),   # activation rows
                # Folded weight & bias are grid-invariant -> resident in VMEM.
                # (For very large E on v7x, single-buffer them with
                #  pipeline_mode=pl.Buffered(1) to stay inside 64 MiB VMEM.)
                pl.BlockSpec((pe, pe), const_map),
                pl.BlockSpec((1, pe), const_map),
            ],
            out_specs=pl.BlockSpec((block_rows, pe), row_map)),
        compiler_params=pltpu.CompilerParams(
            dimension_semantics=("parallel",),
            vmem_limit_bytes=int(vmem_limit)),
        cost_estimate=cost,
    )(x, w_run, b_run)

    attn_output = out2d.reshape(n, e)
    # Head-averaged attention weights over a single key are the constant 1.0;
    # emitted from the wrapper (in the input dtype) so the kernel keeps a
    # single lane-dense output.
    attn_weights = jnp.ones((n, 1, 1), dtype=query_features.dtype)
    return attn_output, attn_weights


def _reference(xq, xkv, params, num_heads):
    """Plain-JAX reference mirroring full nn.MultiheadAttention math (L=S=1)."""
    wq, wk, wv, wo, bq, bk, bv, bo = params
    n, e = xq.shape
    dh = e // num_heads
    hi = jax.lax.Precision.HIGHEST
    q = (jnp.dot(xq, wq.T, precision=hi) + bq) / math.sqrt(dh)
    k = jnp.dot(xkv, wk.T, precision=hi) + bk
    v = jnp.dot(xkv, wv.T, precision=hi) + bv
    scores = jnp.sum(q.reshape(n, num_heads, dh) * k.reshape(n, num_heads, dh), -1)
    w = jax.nn.softmax(scores[..., None], axis=-1)            # (N, H, 1) -> ones
    attn = (w * v.reshape(n, num_heads, dh)).reshape(n, e)
    out = jnp.dot(attn, wo.T, precision=hi) + bo
    attn_w = jnp.mean(w, axis=1).reshape(n, 1, 1)
    return out, attn_w


if __name__ == "__main__":
    # N chosen non-multiple-of-8 to exercise the ragged-last-block path;
    # E=64 exercises the 2-rows-per-128-lane packing path.
    N, E, H = 20, 64, 8
    key = jax.random.PRNGKey(0)
    k0, k1, k2, k3, k4, k5 = jax.random.split(key, 6)

    query_features = jax.random.normal(k0, (N, E), jnp.float32)
    key_value_features = jax.random.normal(k1, (N, E), jnp.float32)

    # nn.MultiheadAttention parameter shapes: in_proj (3E, E)+(3E,), out (E, E)+(E,)
    bound = 1.0 / math.sqrt(E)
    in_proj_w = jax.random.uniform(k2, (3 * E, E), jnp.float32, -bound, bound)
    in_proj_b = jax.random.uniform(k3, (3 * E,), jnp.float32, -bound, bound)
    out_w = jax.random.uniform(k4, (E, E), jnp.float32, -bound, bound)
    out_b = jax.random.uniform(k5, (E,), jnp.float32, -bound, bound)

    wq, wk, wv = in_proj_w[:E], in_proj_w[E:2 * E], in_proj_w[2 * E:]
    bq, bk, bv = in_proj_b[:E], in_proj_b[E:2 * E], in_proj_b[2 * E:]
    params = (wq, wk, wv, out_w, bq, bk, bv, out_b)

    attn_output, attn_weights = cross_attention_forward(
        query_features, key_value_features, params, num_heads=H)
    jax.block_until_ready((attn_output, attn_weights))

    ref_out, ref_w = _reference(query_features, key_value_features, params, H)
    assert attn_output.shape == (N, E)
    assert attn_output.dtype == key_value_features.dtype
    assert attn_weights.shape == (N, 1, 1)
    # Tolerance covers TPU f32 matmuls possibly running bf16 MXU passes at
    # DEFAULT precision (kernel) vs the HIGHEST-precision reference; any
    # structural error (wrong weight/bias/transpose) would be O(1).
    assert jnp.allclose(attn_output, ref_out, rtol=1e-2, atol=1e-2)
    assert jnp.allclose(attn_weights.astype(jnp.float32), ref_w, rtol=1e-5, atol=1e-5)

    print("KERNEL_OK")
</pallas_src>

<mosaic_0001>
module attributes {stable_mosaic.version = 11 : i64} {
  func.func @_fused_proj_kernel(%arg0: i32, %arg1: memref<10x128xf32, #tpu.memory_space<vmem>>, %arg2: memref<128x128xf32, #tpu.memory_space<vmem>>, %arg3: memref<1x128xf32, #tpu.memory_space<vmem>>, %arg4: memref<10x128xf32, #tpu.memory_space<vmem>>) attributes {dimension_semantics = [#tpu.dimension_semantics<parallel>], iteration_bounds = array<i64: 1>, scalar_prefetch = 0 : i64, scratch_operands = 0 : i64, tpu.core_type = #tpu.core_type<tc>, window_params = [{transform_indices = @transform_0, window_bounds = array<i64: 10, 128>}, {pipeline_mode = #tpu.pipeline_mode<synchronous>, transform_indices = @transform_1, window_bounds = array<i64: 128, 128>}, {pipeline_mode = #tpu.pipeline_mode<synchronous>, transform_indices = @transform_2, window_bounds = array<i64: 1, 128>}, {transform_indices = @transform_3, window_bounds = array<i64: 10, 128>}]} {
    %c0 = arith.constant 0 : index
    %c0_0 = arith.constant 0 : index
    %0 = vector.load %arg1[%c0, %c0_0] : memref<10x128xf32, #tpu.memory_space<vmem>>, vector<10x128xf32>
    %c0_1 = arith.constant 0 : index
    %c0_2 = arith.constant 0 : index
    %1 = vector.load %arg2[%c0_1, %c0_2] : memref<128x128xf32, #tpu.memory_space<vmem>>, vector<128x128xf32>
    %cst = arith.constant dense<0.000000e+00> : vector<10x128xf32>
    %2 = tpu.matmul %0, %1, %cst {dimension_numbers = #tpu.dot_dimension_numbers<[1], [0], [0], [1], [0, 0, 1, 1], [], []>} : vector<10x128xf32>, vector<128x128xf32>, vector<10x128xf32> -> vector<10x128xf32>
    %c0_3 = arith.constant 0 : index
    %c0_4 = arith.constant 0 : index
    %3 = vector.load %arg3[%c0_3, %c0_4] : memref<1x128xf32, #tpu.memory_space<vmem>>, vector<1x128xf32>
    %4 = vector.broadcast %3 : vector<1x128xf32> to vector<10x128xf32>
    %5 = arith.addf %2, %4 : vector<10x128xf32>
    %c0_5 = arith.constant 0 : index
    %c0_6 = arith.constant 0 : index
    %6 = vector.load %arg4[%c0_5, %c0_6] : memref<10x128xf32, #tpu.memory_space<vmem>>, vector<10x128xf32>
    tpu.vector_store %arg4[%c0_5, %c0_6], %5 {strides = array<i32>} : memref<10x128xf32, #tpu.memory_space<vmem>>, vector<10x128xf32>,
    return
  }
  func.func @transform_0(%arg0: i32) -> (i32, i32) {
    %c0_i32 = arith.constant 0 : i32
    %c0_i32_0 = arith.constant 0 : i32
    return %arg0, %c0_i32 : i32, i32
  }
  func.func @transform_1(%arg0: i32) -> (i32, i32) {
    %c0_i32 = arith.constant 0 : i32
    %c0_i32_0 = arith.constant 0 : i32
    %c0_i32_1 = arith.constant 0 : i32
    return %c0_i32, %c0_i32_0 : i32, i32
  }
  func.func @transform_2(%arg0: i32) -> (i32, i32) {
    %c0_i32 = arith.constant 0 : i32
    %c0_i32_0 = arith.constant 0 : i32
    %c0_i32_1 = arith.constant 0 : i32
    return %c0_i32, %c0_i32_0 : i32, i32
  }
  func.func @transform_3(%arg0: i32) -> (i32, i32) {
    %c0_i32 = arith.constant 0 : i32
    %c0_i32_0 = arith.constant 0 : i32
    return %arg0, %c0_i32 : i32, i32
  }
}

</mosaic_0001>

<bundles_post_ra>
// kernel: tpu_custom_call.1
= control target key start
LH: loop header
LB: loop body
LE: loop exit
PB: predicated region body
PF: predicated region fallthrough
CT: control target
= control target key end

     0   :  { %8 = vsyncpa [#allocation3], 0  ;;  %s334_s0 = inlined_call_operand.hbm [shape: f32[10,128], index: 0, kind: input, shape index: {}]   ;;  %s335_s1 = inlined_call_operand.hbm [shape: f32[128,128], index: 1, kind: input, shape index: {}]   ;;  %s336_s2 = inlined_call_operand.vmem [shape: f32[1,128], index: 2, kind: input, shape index: {}]   ;;  %s337_s3 = inlined_call_operand.hbm [shape: f32[10,128], index: 3, kind: output, shape index: {}]  }
   0x1   :  { %9 = vsyncpa [#allocation6], 0 }
   0x2   :  { %10 = vsyncpa [#allocation4], 0  ;;  %s288_s12 = smov [#allocation2]  }
   0x3   :  { %s16_s13 = sshll.u32 %s288_s12, 4  ;;  %s17_s13 = int_to_ptr.vmem [resolvable:$true] %s16_s13 }
   0x4   :  { %s230_s14 = scalar_lea.vmem %s17_s13, 256  ;;  %p235_p1 = scmp.lt.s32.totalorder %s17_s13, %s17_s13 }
   0x5   :  { %p231_p0 = scmp.ne.s32.totalorder %s17_s13, %s230_s14  ;;  %p236_p2 = scmp.lt.s32.totalorder %s230_s14, %s230_s14 }
   0x7   :  { %p237_p3 = por %p236_p2, %p235_p1 }
   0x9   :  { %p238_p4 = pnand %p237_p3, %p231_p0 }
   0xb   :  { %241 = shalt.err (!%p238_p4)
}
   0xc   :  { %s289_s15 = smov 128   ;;  %s290_s16 = smov 8  }
   0xd   :  { %22 = dma.hbm_to_vmem [thread:$0]  %s334_s0, 256, %s17_s13, [#allocation3], %s289_s15, %s289_s15, %s290_s16  }
   0xe   :  { %s291_s19 = smov [#allocation5]  }
   0xf   :  { %s28_s20 = sshll.u32 %s291_s19, 4  ;;  %s29_s20 = int_to_ptr.vmem [resolvable:$true] %s28_s20 }
  0x10   :  { %s250_s21 = scalar_lea.vmem %s29_s20, 2048  ;;  %p255_p6 = scmp.lt.s32.totalorder %s29_s20, %s29_s20 }
  0x11   :  { %p251_p5 = scmp.ne.s32.totalorder %s29_s20, %s250_s21  ;;  %p256_p7 = scmp.lt.s32.totalorder %s250_s21, %s250_s21 }
  0x13   :  { %p257_p8 = por %p256_p7, %p255_p6 }
  0x15   :  { %p258_p9 = pnand %p257_p8, %p251_p5 }
  0x17   :  { %261 = shalt.err (!%p258_p9)
}
  0x18   :  { %34 = dma.hbm_to_vmem [thread:$0]  %s335_s1, 2048, %s29_s20, [#allocation6], %s289_s15, %s289_s15, %s290_s16  }
  0x19   :  { %282 = dma.done.wait [#allocation3], 256  }
  0x1a   :  { %283 = vsyncadd [#allocation3], 4294967040 }
  0x1b   :  { %284 = dma.done.wait [#allocation6], 2048  }
  0x1c   :  { %285 = vsyncadd [#allocation6], 4294965248  ;;  %v60_v0 = vld [vmem:[#allocation5 + $0x78] sm:$0xff]  ;;  %v59_v1 = vld [vmem:[#allocation5 + $0x70] sm:$0xff]  ;;  %s292_s24 = smov [#allocation7]  }
  0x1d   :  { %182 = vmatprep.subr.mxu0 %v60_v0  ;;  %v58_v2 = vld [vmem:[#allocation5 + $0x68] sm:$0xff]  ;;  %v57_v3 = vld [vmem:[#allocation5 + $0x60] sm:$0xff]  ;;  %v43_v4 = vld [vmem:[#allocation2] sm:$0xff]  ;;  %s150_s25 = sshll.u32 %s292_s24, 4  ;;  %s151_s25 = int_to_ptr.vmem [resolvable:$true] %s150_s25 }
  0x1e   :  { %183 = vmatpush3.msra.mxu0 %v60_v0  ;;  %v56_v5 = vld [vmem:[#allocation5 + $0x58] sm:$0xff]  ;;  %214 = vmatprep.mubr.f32.mxu0 %v43_v4  ;;  %v55_v6 = vld [vmem:[#allocation5 + $0x50] sm:$0xff]  ;;  %v54_v7 = vld [vmem:[#allocation5 + $0x48] sm:$0xff]  ;;  %s262_s26 = scalar_lea.vmem %s151_s25, 256  ;;  %p267_p11 = scmp.lt.s32.totalorder %s151_s25, %s151_s25 }
  0x1f   :  { %184 = vmatprep.subr.mxu0 %v59_v1  ;;  %v53_v8 = vld [vmem:[#allocation5 + $0x40] sm:$0xff]  ;;  %v52_v9 = vld [vmem:[#allocation5 + $0x38] sm:$0xff]  ;;  %v51_v10 = vld [vmem:[#allocation5 + $0x30] sm:$0xff]  ;;  %p263_p10 = scmp.ne.s32.totalorder %s151_s25, %s262_s26  ;;  %p268_p12 = scmp.lt.s32.totalorder %s262_s26, %s262_s26 }
  0x20   :  { %185 = vmatpush3.msra.mxu0 %v59_v1  ;;  %v50_v11 = vld [vmem:[#allocation5 + $0x28] sm:$0xff]  ;;  %v49_v12 = vld [vmem:[#allocation5 + $0x20] sm:$0xff]  ;;  %v48_v13 = vld [vmem:[#allocation5 + $0x18] sm:$0xff] }
  0x21   :  { %186 = vmatprep.subr.mxu0 %v58_v2  ;;  %v47_v14 = vld [vmem:[#allocation5 + $0x10] sm:$0xff]  ;;  %v46_v15 = vld [vmem:[#allocation5 + $0x8] sm:$0xff]  ;;  %v45_v16 = vld [vmem:[#allocation5] sm:$0xff]  ;;  %p269_p13 = por %p268_p12, %p267_p11 }
  0x22   :  { %187 = vmatpush3.msra.mxu0 %v58_v2  ;;  %v44_v17 = vld [vmem:[#allocation2 + $0x8] sm:$0x3]  ;;  %v163_v18 = vld [vmem:[%s336_s2] ss:$0 sm:$0xff] }
  0x23   :  { %188 = vmatprep.subr.mxu0 %v57_v3  ;;  %p270_p0 = pnand %p269_p13, %p263_p10 }
  0x24   :  { %189 = vmatpush3.msra.mxu0 %v57_v3 }
  0x25   :  { %190 = vmatprep.subr.mxu0 %v56_v5 }
  0x26   :  { %191 = vmatpush3.msra.mxu0 %v56_v5 }
  0x27   :  { %192 = vmatprep.subr.mxu0 %v55_v6 }
  0x28   :  { %193 = vmatpush3.msra.mxu0 %v55_v6 }
  0x29   :  { %194 = vmatprep.subr.mxu0 %v54_v7 }
  0x2a   :  { %195 = vmatpush3.msra.mxu0 %v54_v7 }
  0x2b   :  { %196 = vmatprep.subr.mxu0 %v53_v8 }
  0x2c   :  { %197 = vmatpush3.msra.mxu0 %v53_v8 }
  0x2d   :  { %198 = vmatprep.subr.mxu0 %v52_v9 }
  0x2e   :  { %199 = vmatpush3.msra.mxu0 %v52_v9 }
  0x2f   :  { %200 = vmatprep.subr.mxu0 %v51_v10 }
  0x30   :  { %201 = vmatpush3.msra.mxu0 %v51_v10 }
  0x31   :  { %202 = vmatprep.subr.mxu0 %v50_v11 }
  0x32   :  { %203 = vmatpush3.msra.mxu0 %v50_v11 }
  0x33   :  { %204 = vmatprep.subr.mxu0 %v49_v12 }
  0x34   :  { %205 = vmatpush3.msra.mxu0 %v49_v12 }
  0x35   :  { %206 = vmatprep.subr.mxu0 %v48_v13 }
  0x36   :  { %207 = vmatpush3.msra.mxu0 %v48_v13 }
  0x37   :  { %208 = vmatprep.subr.mxu0 %v47_v14 }
  0x38   :  { %209 = vmatpush3.msra.mxu0 %v47_v14 }
  0x39   :  { %210 = vmatprep.subr.mxu0 %v46_v15 }
  0x3a   :  { %211 = vmatpush3.msra.mxu0 %v46_v15 }
  0x3b   :  { %212 = vmatprep.subr.mxu0 %v45_v16 }
  0x3c   :  { %213 = vmatpush3.msra.mxu0 %v45_v16 }
  0x3d   :  { %215 = vmatmul.mubr.f32.vlgmr.msra.gmra.mxu0 %v44_v17 }
  0xfd   :  { %v216_v19 = vpop.f32.mrf.mxu0 }
  0xfe   :  { %v140_v20 = vadd.f32 %v216_v19, %v163_v18 }
  0xff   :  { %v134_v21 = vpop.f32.mrf.mxu0 }
 0x100   :  { %144 = vst [vmem:[#allocation7 + $0x8] sm:$0x3] %v140_v20  ;;  %v135_v22 = vadd.f32 %v163_v18, %v134_v21 }
 0x102   :  { %143 = vst [vmem:[#allocation7] sm:$0xff] %v135_v22 }
 0x103   :  { %273 = shalt.err (!%p270_p0)
}
 0x104   :  { %156 = dma.vmem_to_hbm [thread:$0]  %s151_s25, 256, %s337_s3, [#allocation4], %s289_s15, %s289_s15, %s290_s16  }
 0x105   :  { %286 = dma.done.wait [#allocation4], 256  }
 0x106   :  { %287 = vsyncadd [#allocation4], 4294967040 }
 0x107   :  { %160 = vsyncpa [#allocation3], 1 }
 0x108   :  { %161 = vsyncpa [#allocation6], 1 }
 0x109   :  { %162 = vsyncpa [#allocation4], 1 }

</bundles_post_ra>
